<compile_context>
chip_gen: v7x
topology: tpu7x:2x2x1
jax: 0.10.0
libtpu: 0.0.40
codegen_flags: <defaults>
</compile_context>

<pallas_src>
import functools

import jax
import jax.numpy as jnp
from jax.experimental import pallas as pl
from jax.experimental.pallas import tpu as pltpu

_BN_EPS = 1e-5
_INV_SQRT2 = 0.7071067811865476
_SQRT_2_OVER_PI = 0.7978845608028654


def _round_up(x, m):
    return ((x + m - 1) // m) * m


def _gelu_exact(x):
    # torch.nn.GELU() default (exact erf) — used by the pure-JAX reference.
    return 0.5 * x * (1.0 + jax.lax.erf(x * _INV_SQRT2))


def _gelu_tanh(x):
    # tanh approximation: the transcendental goes to the EUP slot instead of a
    # long VPU erf polynomial.  Error vs exact GELU is ~3e-3, far inside tolerance.
    return 0.5 * x * (1.0 + jnp.tanh(_SQRT_2_OVER_PI * (x + 0.044715 * x * x * x)))


# -----------------------------------------------------------------------------
# Pallas kernel
# -----------------------------------------------------------------------------
def _engagement_kernel(
    # data tiles
    xt_ref,    # (TILE_B, 1024) tweet text embedding (bf16)
    idx_ref,   # (TILE_B, 5) int32: [verified, months, following, followers, user_type]
    # tweet tower first layer (BN folded): (1024,128) bf16, (1,128) f32
    tw1_ref, tb1_ref,
    # user tower first layer, pre-multiplied embedding tables (BN folded, bf16):
    tm_ref,    # months     (384,128)  (300 used)
    tfg_ref,   # following  (128,128)  (100 used)
    tfr_ref,   # followers  (128,128)  (100 used)
    # 2-row tables as affine terms + folded user bias (f32, (1,128) each)
    dver_ref, dut_ref, ub1_ref,
    # fused block-diagonal second layer: (256,128) bf16, (1,128) f32
    w2_ref, b2_ref,
    # output layer: (1,128) f32 row, (1,1) f32 bias
    wo_ref, bo_ref,
    # output tile (TILE_B, 1) f32
    out_ref,
):
    tile_b = xt_ref.shape[0]

    # ---- tweet tower, first layer (MXU bf16 in / f32 acc) --------------------
    xt = xt_ref[...].astype(jnp.bfloat16)          # no-op when input is bf16
    t_h = jnp.dot(xt, tw1_ref[...], preferred_element_type=jnp.float32) + tb1_ref[...]
    t_h = _gelu_tanh(t_h)                          # (TILE_B, 128) f32

    # ---- user tower, first layer: fused embedding gather ---------------------
    idx = idx_ref[...]                             # (TILE_B, 5) int32

    def onehot_dot(col, table_ref):
        # Gather rows of `table_ref` via a one-hot bf16 MXU matmul (guaranteed
        # lowering; MXU has plenty of slack on this memory-bound kernel).
        width = table_ref.shape[0]
        iota = jax.lax.broadcasted_iota(jnp.int32, (tile_b, width), 1)
        oh = (iota == idx[:, col:col + 1]).astype(jnp.bfloat16)
        return jnp.dot(oh, table_ref[...], preferred_element_type=jnp.float32)

    u_h = (
        onehot_dot(1, tm_ref)                                   # months
        + onehot_dot(2, tfg_ref)                                # following
        + onehot_dot(3, tfr_ref)                                # followers
        + idx[:, 0:1].astype(jnp.float32) * dver_ref[...]       # verified (2 rows)
        + idx[:, 4:5].astype(jnp.float32) * dut_ref[...]        # user_type (2 rows)
        + ub1_ref[...]                                          # bias (+ row0 folds)
    )
    u_h = _gelu_tanh(u_h)                          # (TILE_B, 128) f32

    # ---- fused second layer: one lane-dense N=128 block-diagonal dot ---------
    h = jnp.concatenate([t_h, u_h], axis=-1).astype(jnp.bfloat16)   # (TILE_B, 256)
    feat = jnp.dot(h, w2_ref[...], preferred_element_type=jnp.float32) + b2_ref[...]
    feat = _gelu_tanh(feat)                        # (TILE_B, 128) = [tweet_feat|user_feat]

    # ---- output layer (N=1): VPU multiply + lane reduction, then sigmoid -----
    logit = jnp.sum(feat * wo_ref[...], axis=-1, keepdims=True) + bo_ref[...]
    out_ref[...] = jax.nn.sigmoid(logit)


# -----------------------------------------------------------------------------
# Wrapper
# -----------------------------------------------------------------------------
@functools.partial(jax.jit, static_argnames=("tile_b",))
def engagement_predictor(text_emb, user_idx, kernel_params, tile_b=None):
    """text_emb: (B, 1024) bf16 (f32 also accepted).  user_idx: (B, 5) int32.
    Returns (B, 1) float32 in (0, 1)."""
    B = text_emb.shape[0]
    if tile_b is None:
        b8 = _round_up(B, 8)
        if b8 <= 8:
            tile_b = b8                                  # single full-array tile
        else:
            # >=2 grid tiles where possible so v7x megacore shards the batch axis;
            # multiples of 16 keep bf16 sublane tiling happy; cap at 1024 rows.
            tile_b = min(1024, _round_up(pl.cdiv(b8, 2), 16))
    B_pad = _round_up(B, tile_b)
    if B_pad != B:
        text_emb = jnp.pad(text_emb, ((0, B_pad - B), (0, 0)))
        user_idx = jnp.pad(user_idx, ((0, B_pad - B), (0, 0)))   # idx 0 is in range
    num_tiles = B_pad // tile_b

    data_spec = pl.BlockSpec((tile_b, 1024), lambda i: (i, 0))
    idx_spec = pl.BlockSpec((tile_b, 5), lambda i: (i, 0))

    def const_spec(arr):
        # Full-array block, constant index_map -> stays resident in VMEM across
        # grid steps (no re-DMA).
        return pl.BlockSpec(arr.shape, lambda i: (0, 0))

    in_specs = [data_spec, idx_spec] + [const_spec(p) for p in kernel_params]
    out_spec = pl.BlockSpec((tile_b, 1), lambda i: (i, 0))

    # Advisory cost estimate so XLA schedules surrounding ops around the call.
    flops = 2 * B_pad * (1024 * 128 + (384 + 128 + 128) * 128 + 256 * 128 + 128)
    transcendentals = B_pad * (3 * 128 + 1)                  # 3 GELU layers + sigmoid
    bytes_accessed = (
        text_emb.size * text_emb.dtype.itemsize
        + user_idx.size * 4
        + B_pad * 4
        + sum(int(p.size) * p.dtype.itemsize for p in kernel_params)
    )

    out = pl.pallas_call(
        _engagement_kernel,
        out_shape=jax.ShapeDtypeStruct((B_pad, 1), jnp.float32),
        grid=(num_tiles,),
        in_specs=in_specs,
        out_specs=out_spec,
        compiler_params=pltpu.CompilerParams(
            dimension_semantics=("parallel",),        # megacore sharding on v7x
            vmem_limit_bytes=48 * 1024 * 1024,
        ),
        cost_estimate=pl.CostEstimate(
            flops=flops,
            transcendentals=transcendentals,
            bytes_accessed=bytes_accessed,
        ),
    )(text_emb, user_idx, *kernel_params)
    return out[:B]


# -----------------------------------------------------------------------------
# Parameter construction (synthetic, deterministic)
# -----------------------------------------------------------------------------
def _make_linear(key, fan_in, fan_out):
    kw, kb = jax.random.split(key)
    bound = 1.0 / (fan_in ** 0.5)
    w = jax.random.uniform(kw, (fan_in, fan_out), jnp.float32, -bound, bound)
    b = jax.random.uniform(kb, (1, fan_out), jnp.float32, -bound, bound)
    return w, b


def _make_bn(key, n):
    kg, kb, km, kv = jax.random.split(key, 4)
    gamma = 1.0 + 0.1 * jax.random.normal(kg, (1, n), jnp.float32)
    beta = 0.1 * jax.random.normal(kb, (1, n), jnp.float32)
    mean = 0.1 * jax.random.normal(km, (1, n), jnp.float32)
    var = 1.0 + 0.1 * jax.random.uniform(kv, (1, n), jnp.float32)
    return gamma, beta, mean, var


def _make_tower(key):
    k1, k2, k3, k4 = jax.random.split(key, 4)
    w1, b1 = _make_linear(k1, 1024, 128)
    g1, be1, m1, v1 = _make_bn(k2, 128)
    w2, b2 = _make_linear(k3, 128, 64)
    g2, be2, m2, v2 = _make_bn(k4, 64)
    return [w1, b1, g1, be1, m1, v1, w2, b2, g2, be2, m2, v2]


def _make_params(key):
    """Raw PyTorch-style parameters (Linear weights pre-transposed to (in,out))."""
    kt, ku, ko = jax.random.split(key, 3)
    tweet = _make_tower(kt)
    user = _make_tower(ku)
    wo, bo = _make_linear(ko, 128, 1)
    return tweet + user + [wo, bo]


# -----------------------------------------------------------------------------
# Host-side folding: BN -> Linear, embedding tables -> first user Linear,
# second layers -> one block-diagonal matrix, everything MXU-bound cast to bf16.
# -----------------------------------------------------------------------------
def _fold_params(params, emb_tables):
    (tw1, tb1, tg1, tbe1, tm1, tv1, tw2, tb2, tg2, tbe2, tm2, tv2,
     uw1, ub1, ug1, ube1, um1, uv1, uw2, ub2, ug2, ube2, um2, uv2,
     wo, bo) = params
    e_ver, e_mon, e_fng, e_fwr, e_ut = emb_tables

    def fold(w, b, g, be, m, v):
        s = g * jax.lax.rsqrt(v + _BN_EPS)                 # (1, out)
        return w * s, (b - m) * s + be

    tw1f, tb1f = fold(tw1, tb1, tg1, tbe1, tm1, tv1)
    tw2f, tb2f = fold(tw2, tb2, tg2, tbe2, tm2, tv2)
    uw1f, ub1f = fold(uw1, ub1, ug1, ube1, um1, uv1)
    uw2f, ub2f = fold(uw2, ub2, ug2, ube2, um2, uv2)

    # user_emb = concat([ver(128), months(256), following(256), followers(256), ut(128)])
    # user_emb @ uw1f == sum_k (E_k @ uw1f[rows_k])[idx_k]  -> fold tables into (card_k, 128).
    t_ver = e_ver @ uw1f[0:128]          # (2, 128)
    t_mon = e_mon @ uw1f[128:384]        # (300, 128)
    t_fng = e_fng @ uw1f[384:640]        # (100, 128)
    t_fwr = e_fwr @ uw1f[640:896]        # (100, 128)
    t_ut = e_ut @ uw1f[896:1024]         # (2, 128)

    def pad_rows(t, n):
        return jnp.pad(t, ((0, n - t.shape[0]), (0, 0)))

    tm_tab = pad_rows(t_mon, 384).astype(jnp.bfloat16)     # lane-aligned one-hot widths
    tfg_tab = pad_rows(t_fng, 128).astype(jnp.bfloat16)
    tfr_tab = pad_rows(t_fwr, 128).astype(jnp.bfloat16)

    # 2-row tables: T[idx] = T[0] + idx * (T[1]-T[0]); fold the T[0] rows into the bias.
    d_ver = (t_ver[1] - t_ver[0])[None, :].astype(jnp.float32)
    d_ut = (t_ut[1] - t_ut[0])[None, :].astype(jnp.float32)
    ub1_fold = (ub1f + t_ver[0][None, :] + t_ut[0][None, :]).astype(jnp.float32)

    # Fused block-diagonal second layer: concat([t_h,u_h]) @ W2cat = concat([t_feat,u_feat]).
    w2_cat = jnp.zeros((256, 128), jnp.float32)
    w2_cat = w2_cat.at[0:128, 0:64].set(tw2f).at[128:256, 64:128].set(uw2f)
    w2_cat = w2_cat.astype(jnp.bfloat16)
    b2_cat = jnp.concatenate([tb2f, ub2f], axis=-1).astype(jnp.float32)   # (1, 128)

    wo_row = jnp.transpose(wo).astype(jnp.float32)                        # (1, 128)

    return (tw1f.astype(jnp.bfloat16), tb1f.astype(jnp.float32),
            tm_tab, tfg_tab, tfr_tab,
            d_ver, d_ut, ub1_fold,
            w2_cat, b2_cat,
            wo_row, bo.astype(jnp.float32))


# -----------------------------------------------------------------------------
# Pure-JAX f32 reference of the original (unfolded) math, exact-erf GELU
# -----------------------------------------------------------------------------
def _reference(text_emb, user_idx, params, emb_tables):
    (tw1, tb1, tg1, tbe1, tm1, tv1, tw2, tb2, tg2, tbe2, tm2, tv2,
     uw1, ub1, ug1, ube1, um1, uv1, uw2, ub2, ug2, ube2, um2, uv2,
     wo, bo) = params

    user_emb = jnp.concatenate(
        [tab[user_idx[:, k]] for k, tab in enumerate(emb_tables)], axis=1)  # (B, 1024)

    def tower(x, w1, b1, g1, be1, m1, v1, w2, b2, g2, be2, m2, v2):
        h = x @ w1 + b1
        h = (h - m1) / jnp.sqrt(v1 + _BN_EPS) * g1 + be1
        h = _gelu_exact(h)
        h = h @ w2 + b2
        h = (h - m2) / jnp.sqrt(v2 + _BN_EPS) * g2 + be2
        return _gelu_exact(h)

    tf = tower(text_emb, tw1, tb1, tg1, tbe1, tm1, tv1, tw2, tb2, tg2, tbe2, tm2, tv2)
    uf = tower(user_emb, uw1, ub1, ug1, ube1, um1, uv1, uw2, ub2, ug2, ube2, um2, uv2)
    return jax.nn.sigmoid(jnp.concatenate([tf, uf], axis=-1) @ wo + bo)


if __name__ == "__main__":
    key = jax.random.PRNGKey(0)
    k_param, k_text, k_emb, k_idx = jax.random.split(key, 4)

    B = 8  # batch of input_dicts

    raw_params = _make_params(k_param)

    # Embedding tables (f32 master copies, as in the torch module).
    emb_keys = jax.random.split(k_emb, 5)
    table_dims = [(2, 128), (300, 256), (100, 256), (100, 256), (2, 128)]
    emb_tables = [jax.random.normal(k, shp, jnp.float32)
                  for k, shp in zip(emb_keys, table_dims)]

    kernel_params = _fold_params(raw_params, emb_tables)

    # parse_input equivalent: upstream produces/stores the tweet text embedding
    # in bf16 (no wrapper-side cast, no extra HBM round trip).
    text_emb = jax.random.normal(k_text, (B, 1024), jnp.float32).astype(jnp.bfloat16)

    # user_feature_process equivalent: integer feature indices
    # [verified, months, following, followers, user_type].
    # TODO(synk): the python dict / datetime / log2-bucketing parsing itself stays host-side.
    cards = [2, 300, 100, 100, 2]
    idx_keys = jax.random.split(k_idx, 5)
    user_idx = jnp.stack(
        [jax.random.randint(k, (B,), 0, c) for k, c in zip(idx_keys, cards)],
        axis=1).astype(jnp.int32)                                       # (B, 5)

    # --- run the Pallas kernel ------------------------------------------------
    out = engagement_predictor(text_emb, user_idx, kernel_params)
    out = jax.block_until_ready(out)

    assert out.shape == (B, 1), out.shape
    ref = _reference(text_emb.astype(jnp.float32), user_idx, raw_params, emb_tables)
    assert jnp.all(jnp.isfinite(out))
    assert jnp.allclose(out, ref, atol=1e-2, rtol=1e-2), (out, ref)

    print("KERNEL_OK")
</pallas_src>

<mosaic_0001>
module attributes {stable_mosaic.version = 11 : i64} {
  func.func @_engagement_kernel(%arg0: i32, %arg1: memref<8x1024xbf16, #tpu.memory_space<vmem>>, %arg2: memref<8x5xi32, #tpu.memory_space<vmem>>, %arg3: memref<1024x128xbf16, #tpu.memory_space<vmem>>, %arg4: memref<1x128xf32, #tpu.memory_space<vmem>>, %arg5: memref<384x128xbf16, #tpu.memory_space<vmem>>, %arg6: memref<128x128xbf16, #tpu.memory_space<vmem>>, %arg7: memref<128x128xbf16, #tpu.memory_space<vmem>>, %arg8: memref<1x128xf32, #tpu.memory_space<vmem>>, %arg9: memref<1x128xf32, #tpu.memory_space<vmem>>, %arg10: memref<1x128xf32, #tpu.memory_space<vmem>>, %arg11: memref<256x128xbf16, #tpu.memory_space<vmem>>, %arg12: memref<1x128xf32, #tpu.memory_space<vmem>>, %arg13: memref<1x128xf32, #tpu.memory_space<vmem>>, %arg14: memref<1x1xf32, #tpu.memory_space<vmem>>, %arg15: memref<8x1xf32, #tpu.memory_space<vmem>>) attributes {dimension_semantics = [#tpu.dimension_semantics<parallel>], iteration_bounds = array<i64: 1>, scalar_prefetch = 0 : i64, scratch_operands = 0 : i64, tpu.core_type = #tpu.core_type<tc>, window_params = [{transform_indices = @transform_0, window_bounds = array<i64: 8, 1024>}, {transform_indices = @transform_1, window_bounds = array<i64: 8, 5>}, {pipeline_mode = #tpu.pipeline_mode<synchronous>, transform_indices = @transform_2, window_bounds = array<i64: 1024, 128>}, {pipeline_mode = #tpu.pipeline_mode<synchronous>, transform_indices = @transform_3, window_bounds = array<i64: 1, 128>}, {pipeline_mode = #tpu.pipeline_mode<synchronous>, transform_indices = @transform_4, window_bounds = array<i64: 384, 128>}, {pipeline_mode = #tpu.pipeline_mode<synchronous>, transform_indices = @transform_5, window_bounds = array<i64: 128, 128>}, {pipeline_mode = #tpu.pipeline_mode<synchronous>, transform_indices = @transform_6, window_bounds = array<i64: 128, 128>}, {pipeline_mode = #tpu.pipeline_mode<synchronous>, transform_indices = @transform_7, window_bounds = array<i64: 1, 128>}, {pipeline_mode = #tpu.pipeline_mode<synchronous>, transform_indices = @transform_8, window_bounds = array<i64: 1, 128>}, {pipeline_mode = #tpu.pipeline_mode<synchronous>, transform_indices = @transform_9, window_bounds = array<i64: 1, 128>}, {pipeline_mode = #tpu.pipeline_mode<synchronous>, transform_indices = @transform_10, window_bounds = array<i64: 256, 128>}, {pipeline_mode = #tpu.pipeline_mode<synchronous>, transform_indices = @transform_11, window_bounds = array<i64: 1, 128>}, {pipeline_mode = #tpu.pipeline_mode<synchronous>, transform_indices = @transform_12, window_bounds = array<i64: 1, 128>}, {pipeline_mode = #tpu.pipeline_mode<synchronous>, transform_indices = @transform_13, window_bounds = array<i64: 1, 1>}, {transform_indices = @transform_14, window_bounds = array<i64: 8, 1>}]} {
    %c0 = arith.constant 0 : index
    %c0_0 = arith.constant 0 : index
    %0 = vector.load %arg1[%c0, %c0_0] : memref<8x1024xbf16, #tpu.memory_space<vmem>>, vector<8x1024xbf16>
    %c0_1 = arith.constant 0 : index
    %c0_2 = arith.constant 0 : index
    %1 = vector.load %arg3[%c0_1, %c0_2] : memref<1024x128xbf16, #tpu.memory_space<vmem>>, vector<1024x128xbf16>
    %cst = arith.constant dense<0.000000e+00> : vector<8x128xf32>
    %2 = tpu.matmul %0, %1, %cst {dimension_numbers = #tpu.dot_dimension_numbers<[1], [0], [0], [1], [0, 0, 1, 1], [], []>} : vector<8x1024xbf16>, vector<1024x128xbf16>, vector<8x128xf32> -> vector<8x128xf32>
    %c0_3 = arith.constant 0 : index
    %c0_4 = arith.constant 0 : index
    %3 = vector.load %arg4[%c0_3, %c0_4] : memref<1x128xf32, #tpu.memory_space<vmem>>, vector<1x128xf32>
    %4 = vector.broadcast %3 : vector<1x128xf32> to vector<8x128xf32>
    %5 = arith.addf %2, %4 : vector<8x128xf32>
    %cst_5 = arith.constant 5.000000e-01 : f32
    %6 = vector.broadcast %cst_5 : f32 to vector<8x128xf32>
    %7 = arith.mulf %6, %5 : vector<8x128xf32>
    %cst_6 = arith.constant 4.471500e-02 : f32
    %8 = vector.broadcast %cst_6 : f32 to vector<8x128xf32>
    %9 = arith.mulf %8, %5 : vector<8x128xf32>
    %10 = arith.mulf %9, %5 : vector<8x128xf32>
    %11 = arith.mulf %10, %5 : vector<8x128xf32>
    %12 = arith.addf %5, %11 : vector<8x128xf32>
    %cst_7 = arith.constant 0.797884583 : f32
    %13 = vector.broadcast %cst_7 : f32 to vector<8x128xf32>
    %14 = arith.mulf %13, %12 : vector<8x128xf32>
    %15 = math.tanh %14 : vector<8x128xf32>
    %cst_8 = arith.constant 1.000000e+00 : f32
    %16 = vector.broadcast %cst_8 : f32 to vector<8x128xf32>
    %17 = arith.addf %16, %15 : vector<8x128xf32>
    %18 = arith.mulf %7, %17 : vector<8x128xf32>
    %c0_9 = arith.constant 0 : index
    %c0_10 = arith.constant 0 : index
    %19 = vector.load %arg2[%c0_9, %c0_10] : memref<8x5xi32, #tpu.memory_space<vmem>>, vector<8x5xi32>
    %20 = tpu.iota {dimensions = array<i32: 1>} : vector<8x384xi32>
    %21 = vector.extract_strided_slice %19 {offsets = [0, 1], sizes = [8, 1], strides = [1, 1]} : vector<8x5xi32> to vector<8x1xi32>
    %22 = vector.broadcast %21 : vector<8x1xi32> to vector<8x384xi32>
    %23 = arith.cmpi eq, %20, %22 : vector<8x384xi32>
    %24 = arith.extui %23 : vector<8x384xi1> to vector<8x384xi32>
    %25 = arith.sitofp %24 : vector<8x384xi32> to vector<8x384xf32>
    %26 = arith.truncf %25 : vector<8x384xf32> to vector<8x384xbf16>
    %c0_11 = arith.constant 0 : index
    %c0_12 = arith.constant 0 : index
    %27 = vector.load %arg5[%c0_11, %c0_12] : memref<384x128xbf16, #tpu.memory_space<vmem>>, vector<384x128xbf16>
    %cst_13 = arith.constant dense<0.000000e+00> : vector<8x128xf32>
    %28 = tpu.matmul %26, %27, %cst_13 {dimension_numbers = #tpu.dot_dimension_numbers<[1], [0], [0], [1], [0, 0, 1, 1], [], []>} : vector<8x384xbf16>, vector<384x128xbf16>, vector<8x128xf32> -> vector<8x128xf32>
    %29 = tpu.iota {dimensions = array<i32: 1>} : vector<8x128xi32>
    %30 = vector.extract_strided_slice %19 {offsets = [0, 2], sizes = [8, 1], strides = [1, 1]} : vector<8x5xi32> to vector<8x1xi32>
    %31 = vector.broadcast %30 : vector<8x1xi32> to vector<8x128xi32>
    %32 = arith.cmpi eq, %29, %31 : vector<8x128xi32>
    %33 = arith.extui %32 : vector<8x128xi1> to vector<8x128xi32>
    %34 = arith.sitofp %33 : vector<8x128xi32> to vector<8x128xf32>
    %35 = arith.truncf %34 : vector<8x128xf32> to vector<8x128xbf16>
    %c0_14 = arith.constant 0 : index
    %c0_15 = arith.constant 0 : index
    %36 = vector.load %arg6[%c0_14, %c0_15] : memref<128x128xbf16, #tpu.memory_space<vmem>>, vector<128x128xbf16>
    %cst_16 = arith.constant dense<0.000000e+00> : vector<8x128xf32>
    %37 = tpu.matmul %35, %36, %cst_16 {dimension_numbers = #tpu.dot_dimension_numbers<[1], [0], [0], [1], [0, 0, 1, 1], [], []>} : vector<8x128xbf16>, vector<128x128xbf16>, vector<8x128xf32> -> vector<8x128xf32>
    %38 = arith.addf %28, %37 : vector<8x128xf32>
    %39 = tpu.iota {dimensions = array<i32: 1>} : vector<8x128xi32>
    %40 = vector.extract_strided_slice %19 {offsets = [0, 3], sizes = [8, 1], strides = [1, 1]} : vector<8x5xi32> to vector<8x1xi32>
    %41 = vector.broadcast %40 : vector<8x1xi32> to vector<8x128xi32>
    %42 = arith.cmpi eq, %39, %41 : vector<8x128xi32>
    %43 = arith.extui %42 : vector<8x128xi1> to vector<8x128xi32>
    %44 = arith.sitofp %43 : vector<8x128xi32> to vector<8x128xf32>
    %45 = arith.truncf %44 : vector<8x128xf32> to vector<8x128xbf16>
    %c0_17 = arith.constant 0 : index
    %c0_18 = arith.constant 0 : index
    %46 = vector.load %arg7[%c0_17, %c0_18] : memref<128x128xbf16, #tpu.memory_space<vmem>>, vector<128x128xbf16>
    %cst_19 = arith.constant dense<0.000000e+00> : vector<8x128xf32>
    %47 = tpu.matmul %45, %46, %cst_19 {dimension_numbers = #tpu.dot_dimension_numbers<[1], [0], [0], [1], [0, 0, 1, 1], [], []>} : vector<8x128xbf16>, vector<128x128xbf16>, vector<8x128xf32> -> vector<8x128xf32>
    %48 = arith.addf %38, %47 : vector<8x128xf32>
    %49 = vector.extract_strided_slice %19 {offsets = [0, 0], sizes = [8, 1], strides = [1, 1]} : vector<8x5xi32> to vector<8x1xi32>
    %50 = arith.sitofp %49 : vector<8x1xi32> to vector<8x1xf32>
    %c0_20 = arith.constant 0 : index
    %c0_21 = arith.constant 0 : index
    %51 = vector.load %arg8[%c0_20, %c0_21] : memref<1x128xf32, #tpu.memory_space<vmem>>, vector<1x128xf32>
    %52 = vector.broadcast %50 : vector<8x1xf32> to vector<8x128xf32>
    %53 = vector.broadcast %51 : vector<1x128xf32> to vector<8x128xf32>
    %54 = arith.mulf %52, %53 : vector<8x128xf32>
    %55 = arith.addf %48, %54 : vector<8x128xf32>
    %56 = vector.extract_strided_slice %19 {offsets = [0, 4], sizes = [8, 1], strides = [1, 1]} : vector<8x5xi32> to vector<8x1xi32>
    %57 = arith.sitofp %56 : vector<8x1xi32> to vector<8x1xf32>
    %c0_22 = arith.constant 0 : index
    %c0_23 = arith.constant 0 : index
    %58 = vector.load %arg9[%c0_22, %c0_23] : memref<1x128xf32, #tpu.memory_space<vmem>>, vector<1x128xf32>
    %59 = vector.broadcast %57 : vector<8x1xf32> to vector<8x128xf32>
    %60 = vector.broadcast %58 : vector<1x128xf32> to vector<8x128xf32>
    %61 = arith.mulf %59, %60 : vector<8x128xf32>
    %62 = arith.addf %55, %61 : vector<8x128xf32>
    %c0_24 = arith.constant 0 : index
    %c0_25 = arith.constant 0 : index
    %63 = vector.load %arg10[%c0_24, %c0_25] : memref<1x128xf32, #tpu.memory_space<vmem>>, vector<1x128xf32>
    %64 = vector.broadcast %63 : vector<1x128xf32> to vector<8x128xf32>
    %65 = arith.addf %62, %64 : vector<8x128xf32>
    %cst_26 = arith.constant 5.000000e-01 : f32
    %66 = vector.broadcast %cst_26 : f32 to vector<8x128xf32>
    %67 = arith.mulf %66, %65 : vector<8x128xf32>
    %cst_27 = arith.constant 4.471500e-02 : f32
    %68 = vector.broadcast %cst_27 : f32 to vector<8x128xf32>
    %69 = arith.mulf %68, %65 : vector<8x128xf32>
    %70 = arith.mulf %69, %65 : vector<8x128xf32>
    %71 = arith.mulf %70, %65 : vector<8x128xf32>
    %72 = arith.addf %65, %71 : vector<8x128xf32>
    %cst_28 = arith.constant 0.797884583 : f32
    %73 = vector.broadcast %cst_28 : f32 to vector<8x128xf32>
    %74 = arith.mulf %73, %72 : vector<8x128xf32>
    %75 = math.tanh %74 : vector<8x128xf32>
    %cst_29 = arith.constant 1.000000e+00 : f32
    %76 = vector.broadcast %cst_29 : f32 to vector<8x128xf32>
    %77 = arith.addf %76, %75 : vector<8x128xf32>
    %78 = arith.mulf %67, %77 : vector<8x128xf32>
    %79 = tpu.concatenate %18, %78 in 1 : vector<8x128xf32>, vector<8x128xf32> -> vector<8x256xf32>
    %80 = arith.truncf %79 : vector<8x256xf32> to vector<8x256xbf16>
    %c0_30 = arith.constant 0 : index
    %c0_31 = arith.constant 0 : index
    %81 = vector.load %arg11[%c0_30, %c0_31] : memref<256x128xbf16, #tpu.memory_space<vmem>>, vector<256x128xbf16>
    %cst_32 = arith.constant dense<0.000000e+00> : vector<8x128xf32>
    %82 = tpu.matmul %80, %81, %cst_32 {dimension_numbers = #tpu.dot_dimension_numbers<[1], [0], [0], [1], [0, 0, 1, 1], [], []>} : vector<8x256xbf16>, vector<256x128xbf16>, vector<8x128xf32> -> vector<8x128xf32>
    %c0_33 = arith.constant 0 : index
    %c0_34 = arith.constant 0 : index
    %83 = vector.load %arg12[%c0_33, %c0_34] : memref<1x128xf32, #tpu.memory_space<vmem>>, vector<1x128xf32>
    %84 = vector.broadcast %83 : vector<1x128xf32> to vector<8x128xf32>
    %85 = arith.addf %82, %84 : vector<8x128xf32>
    %cst_35 = arith.constant 5.000000e-01 : f32
    %86 = vector.broadcast %cst_35 : f32 to vector<8x128xf32>
    %87 = arith.mulf %86, %85 : vector<8x128xf32>
    %cst_36 = arith.constant 4.471500e-02 : f32
    %88 = vector.broadcast %cst_36 : f32 to vector<8x128xf32>
    %89 = arith.mulf %88, %85 : vector<8x128xf32>
    %90 = arith.mulf %89, %85 : vector<8x128xf32>
    %91 = arith.mulf %90, %85 : vector<8x128xf32>
    %92 = arith.addf %85, %91 : vector<8x128xf32>
    %cst_37 = arith.constant 0.797884583 : f32
    %93 = vector.broadcast %cst_37 : f32 to vector<8x128xf32>
    %94 = arith.mulf %93, %92 : vector<8x128xf32>
    %95 = math.tanh %94 : vector<8x128xf32>
    %cst_38 = arith.constant 1.000000e+00 : f32
    %96 = vector.broadcast %cst_38 : f32 to vector<8x128xf32>
    %97 = arith.addf %96, %95 : vector<8x128xf32>
    %98 = arith.mulf %87, %97 : vector<8x128xf32>
    %c0_39 = arith.constant 0 : index
    %c0_40 = arith.constant 0 : index
    %99 = vector.load %arg13[%c0_39, %c0_40] : memref<1x128xf32, #tpu.memory_space<vmem>>, vector<1x128xf32>
    %100 = vector.broadcast %99 : vector<1x128xf32> to vector<8x128xf32>
    %101 = arith.mulf %98, %100 : vector<8x128xf32>
    %cst_41 = arith.constant dense<0.000000e+00> : vector<8xf32>
    %102 = vector.multi_reduction <add>, %101, %cst_41 [1] : vector<8x128xf32> to vector<8xf32>
    %103 = vector.shape_cast %102 : vector<8xf32> to vector<8x1xf32>
    %c0_42 = arith.constant 0 : index
    %c0_43 = arith.constant 0 : index
    %104 = vector.load %arg14[%c0_42, %c0_43] : memref<1x1xf32, #tpu.memory_space<vmem>>, vector<1x1xf32>
    %105 = vector.broadcast %104 : vector<1x1xf32> to vector<8x1xf32>
    %106 = arith.addf %103, %105 : vector<8x1xf32>
    %107 = arith.negf %106 : vector<8x1xf32>
    %108 = math.exp %107 : vector<8x1xf32>
    %cst_44 = arith.constant 1.000000e+00 : f32
    %109 = vector.broadcast %cst_44 : f32 to vector<8x1xf32>
    %110 = arith.addf %109, %108 : vector<8x1xf32>
    %111 = arith.divf %109, %110 : vector<8x1xf32>
    %c0_45 = arith.constant 0 : index
    %c0_46 = arith.constant 0 : index
    %112 = vector.load %arg15[%c0_45, %c0_46] : memref<8x1xf32, #tpu.memory_space<vmem>>, vector<8x1xf32>
    tpu.vector_store %arg15[%c0_45, %c0_46], %111 {strides = array<i32>} : memref<8x1xf32, #tpu.memory_space<vmem>>, vector<8x1xf32>,
    return
  }
  func.func @transform_0(%arg0: i32) -> (i32, i32) {
    %c0_i32 = arith.constant 0 : i32
    %c0_i32_0 = arith.constant 0 : i32
    return %arg0, %c0_i32 : i32, i32
  }
  func.func @transform_1(%arg0: i32) -> (i32, i32) {
    %c0_i32 = arith.constant 0 : i32
    %c0_i32_0 = arith.constant 0 : i32
    return %arg0, %c0_i32 : i32, i32
  }
  func.func @transform_2(%arg0: i32) -> (i32, i32) {
    %c0_i32 = arith.constant 0 : i32
    %c0_i32_0 = arith.constant 0 : i32
    %c0_i32_1 = arith.constant 0 : i32
    return %c0_i32, %c0_i32_0 : i32, i32
  }
  func.func @transform_3(%arg0: i32) -> (i32, i32) {
    %c0_i32 = arith.constant 0 : i32
    %c0_i32_0 = arith.constant 0 : i32
    %c0_i32_1 = arith.constant 0 : i32
    return %c0_i32, %c0_i32_0 : i32, i32
  }
  func.func @transform_4(%arg0: i32) -> (i32, i32) {
    %c0_i32 = arith.constant 0 : i32
    %c0_i32_0 = arith.constant 0 : i32
    %c0_i32_1 = arith.constant 0 : i32
    return %c0_i32, %c0_i32_0 : i32, i32
  }
  func.func @transform_5(%arg0: i32) -> (i32, i32) {
    %c0_i32 = arith.constant 0 : i32
    %c0_i32_0 = arith.constant 0 : i32
    %c0_i32_1 = arith.constant 0 : i32
    return %c0_i32, %c0_i32_0 : i32, i32
  }
  func.func @transform_6(%arg0: i32) -> (i32, i32) {
    %c0_i32 = arith.constant 0 : i32
    %c0_i32_0 = arith.constant 0 : i32
    %c0_i32_1 = arith.constant 0 : i32
    return %c0_i32, %c0_i32_0 : i32, i32
  }
  func.func @transform_7(%arg0: i32) -> (i32, i32) {
    %c0_i32 = arith.constant 0 : i32
    %c0_i32_0 = arith.constant 0 : i32
    %c0_i32_1 = arith.constant 0 : i32
    return %c0_i32, %c0_i32_0 : i32, i32
  }
  func.func @transform_8(%arg0: i32) -> (i32, i32) {
    %c0_i32 = arith.constant 0 : i32
    %c0_i32_0 = arith.constant 0 : i32
    %c0_i32_1 = arith.constant 0 : i32
    return %c0_i32, %c0_i32_0 : i32, i32
  }
  func.func @transform_9(%arg0: i32) -> (i32, i32) {
    %c0_i32 = arith.constant 0 : i32
    %c0_i32_0 = arith.constant 0 : i32
    %c0_i32_1 = arith.constant 0 : i32
    return %c0_i32, %c0_i32_0 : i32, i32
  }
  func.func @transform_10(%arg0: i32) -> (i32, i32) {
    %c0_i32 = arith.constant 0 : i32
    %c0_i32_0 = arith.constant 0 : i32
    %c0_i32_1 = arith.constant 0 : i32
    return %c0_i32, %c0_i32_0 : i32, i32
  }
  func.func @transform_11(%arg0: i32) -> (i32, i32) {
    %c0_i32 = arith.constant 0 : i32
    %c0_i32_0 = arith.constant 0 : i32
    %c0_i32_1 = arith.constant 0 : i32
    return %c0_i32, %c0_i32_0 : i32, i32
  }
  func.func @transform_12(%arg0: i32) -> (i32, i32) {
    %c0_i32 = arith.constant 0 : i32
    %c0_i32_0 = arith.constant 0 : i32
    %c0_i32_1 = arith.constant 0 : i32
    return %c0_i32, %c0_i32_0 : i32, i32
  }
  func.func @transform_13(%arg0: i32) -> (i32, i32) {
    %c0_i32 = arith.constant 0 : i32
    %c0_i32_0 = arith.constant 0 : i32
    %c0_i32_1 = arith.constant 0 : i32
    return %c0_i32, %c0_i32_0 : i32, i32
  }
  func.func @transform_14(%arg0: i32) -> (i32, i32) {
    %c0_i32 = arith.constant 0 : i32
    %c0_i32_0 = arith.constant 0 : i32
    return %arg0, %c0_i32 : i32, i32
  }
}

</mosaic_0001>

<bundles_post_ra>
// kernel: engagement_predictor.1
= control target key start
LH: loop header
LB: loop body
LE: loop exit
PB: predicated region body
PF: predicated region fallthrough
CT: control target
= control target key end

     0   :  { %s2597_s0 = inlined_call_operand.hbm [shape: bf16[8,1024], index: 0, kind: input, shape index: {}]   ;;  %s2598_s1 = inlined_call_operand.hbm [shape: s32[8,5], index: 1, kind: input, shape index: {}]   ;;  %s2599_s2 = inlined_call_operand.hbm [shape: bf16[1024,128], index: 2, kind: input, shape index: {}]   ;;  %s2600_s3 = inlined_call_operand.vmem [shape: f32[1,128], index: 3, kind: input, shape index: {}]   ;;  %s2601_s4 = inlined_call_operand.hbm [shape: bf16[384,128], index: 4, kind: input, shape index: {}]   ;;  %s2602_s5 = inlined_call_operand.hbm [shape: bf16[128,128], index: 5, kind: input, shape index: {}]   ;;  %s2603_s6 = inlined_call_operand.hbm [shape: bf16[128,128], index: 6, kind: input, shape index: {}]   ;;  %s2604_s7 = inlined_call_operand.vmem [shape: f32[1,128], index: 7, kind: input, shape index: {}]   ;;  %s2605_s8 = inlined_call_operand.vmem [shape: f32[1,128], index: 8, kind: input, shape index: {}]   ;;  %s2606_s9 = inlined_call_operand.vmem [shape: f32[1,128], index: 9, kind: input, shape index: {}]   ;;  %s2607_s10 = inlined_call_operand.hbm [shape: bf16[256,128], index: 10, kind: input, shape index: {}]   ;;  %s2608_s11 = inlined_call_operand.vmem [shape: f32[1,128], index: 11, kind: input, shape index: {}]   ;;  %s2609_s12 = inlined_call_operand.vmem [shape: f32[1,128], index: 12, kind: input, shape index: {}]   ;;  %s2610_s13 = inlined_call_operand.<no memory space> [shape: f32[1,1], index: 13, kind: input, shape index: {}]   ;;  %s2611_s14 = inlined_call_operand.vmem [shape: f32[8,1], index: 14, kind: output, shape index: {}]  }
   0x1   :  { %v19_v0 = vstv %s2610_s13 }
   0x2   :  { %20 = vst [vmem:[#allocation2] sm:$0x1] %v19_v0 }
   0x3   :  { %21 = vsyncpa [#allocation4], 0 }
   0x4   :  { %22 = vsyncpa [#allocation6], 0 }
   0x5   :  { %23 = vsyncpa [#allocation9], 0 }
   0x6   :  { %24 = vsyncpa [#allocation12], 0  ;;  %s2334_s15 = smov [#allocation5]   ;;  %s2172_s19 = scalar_lea.hbm %s2598_s1, 128 }
   0x7   :  { %s41_s16 = sshll.u32 %s2334_s15, 4  ;;  %p2173_p0 = scmp.ne.s32.totalorder %s2598_s1, %s2172_s19  ;;  %s42_s16 = int_to_ptr.vmem [resolvable:$true] %s41_s16 }
   0x8   :  { %p2176_p1 = scmp.lt.u32.totalorder %s2172_s19, %s2598_s1 }
   0xa   :  { %p2178_p2 = pnand %p2176_p1, %p2173_p0 }
   0xc   :  { %2181 = shalt.err (!%p2178_p2)
}
   0xd   :  { %s2182_s13 = scalar_lea.vmem %s42_s16, 128  ;;  %p2187_p4 = scmp.lt.s32.totalorder %s42_s16, %s42_s16 }
   0xe   :  { %p2183_p3 = scmp.ne.s32.totalorder %s42_s16, %s2182_s13  ;;  %p2188_p5 = scmp.lt.s32.totalorder %s2182_s13, %s2182_s13 }
  0x10   :  { %p2189_p6 = por %p2188_p5, %p2187_p4 }
  0x12   :  { %p2190_p7 = pnand %p2189_p6, %p2183_p3 }
  0x14   :  { %2193 = shalt.err (!%p2190_p7)
}
  0x15   :  { %44 = dma.hbm_to_vmem [thread:$0]  %s2598_s1, 128, %s42_s16, [#allocation6]  }
  0x16   :  { %s2335_s26 = smov [#allocation8]   ;;  %s2336_s28 = smov [#allocation11]  }
  0x17   :  { %s64_s27 = sshll.u32 %s2335_s26, 4  ;;  %s88_s29 = sshll.u32 %s2336_s28, 4  ;;  %s65_s27 = int_to_ptr.vmem [resolvable:$true] %s64_s27  ;;  %s89_s29 = int_to_ptr.vmem [resolvable:$true] %s88_s29 }
  0x18   :  { %s2194_s17 = scalar_lea.hbm %s2601_s4, 3072 }
  0x19   :  { %p2195_p8 = scmp.ne.s32.totalorder %s2601_s4, %s2194_s17  ;;  %p2198_p9 = scmp.lt.u32.totalorder %s2194_s17, %s2601_s4 }
  0x1b   :  { %p2200_p10 = pnand %p2198_p9, %p2195_p8 }
  0x1d   :  { %2203 = shalt.err (!%p2200_p10)
}
  0x1e   :  { %s2204_s1 = scalar_lea.vmem %s65_s27, 3072  ;;  %p2209_p12 = scmp.lt.s32.totalorder %s65_s27, %s65_s27 }
  0x1f   :  { %p2205_p11 = scmp.ne.s32.totalorder %s65_s27, %s2204_s1  ;;  %p2210_p13 = scmp.lt.s32.totalorder %s2204_s1, %s2204_s1 }
  0x21   :  { %p2211_p0 = por %p2210_p13, %p2209_p12 }
  0x23   :  { %p2212_p1 = pnand %p2211_p0, %p2205_p11 }
  0x25   :  { %2215 = shalt.err (!%p2212_p1)
}
  0x26   :  { %s2337_s16 = smov 64   ;;  %s2338_s22 = smov 4  }
  0x27   :  { %70 = dma.hbm_to_vmem [thread:$0]  %s2601_s4, 3072, %s65_s27, [#allocation9], %s2337_s16, %s2337_s16, %s2338_s22  }
  0x28   :  { %s2216_s26 = scalar_lea.hbm %s2603_s6, 1024 }
  0x29   :  { %p2217_p2 = scmp.ne.s32.totalorder %s2603_s6, %s2216_s26  ;;  %p2220_p3 = scmp.lt.u32.totalorder %s2216_s26, %s2603_s6 }
  0x2b   :  { %p2222_p4 = pnand %p2220_p3, %p2217_p2 }
  0x2d   :  { %2225 = shalt.err (!%p2222_p4)
}
  0x2e   :  { %s2226_s18 = scalar_lea.vmem %s89_s29, 1024  ;;  %p2231_p6 = scmp.lt.s32.totalorder %s89_s29, %s89_s29 }
  0x2f   :  { %p2227_p5 = scmp.ne.s32.totalorder %s89_s29, %s2226_s18  ;;  %p2232_p7 = scmp.lt.s32.totalorder %s2226_s18, %s2226_s18 }
  0x31   :  { %p2233_p8 = por %p2232_p7, %p2231_p6 }
  0x33   :  { %p2234_p9 = pnand %p2233_p8, %p2227_p5 }
  0x35   :  { %2237 = shalt.err (!%p2234_p9)
}
  0x36   :  { %94 = dma.hbm_to_vmem [thread:$0]  %s2603_s6, 1024, %s89_s29, [#allocation12], %s2337_s16, %s2337_s16, %s2338_s22  }
  0x37   :  { %s2339_s19 = smov [#allocation3]   ;;  %s2340_s21 = smov [#allocation7]  }
  0x38   :  { %s31_s20 = sshll.u32 %s2339_s19, 4  ;;  %s50_s1 = sshll.u32 %s2340_s21, 4  ;;  %s32_s20 = int_to_ptr.vmem [resolvable:$true] %s31_s20  ;;  %s51_s1 = int_to_ptr.vmem [resolvable:$true] %s50_s1 }
  0x39   :  { %s2238_s24 = scalar_lea.hbm %s2597_s0, 512 }
  0x3a   :  { %p2239_p10 = scmp.ne.s32.totalorder %s2597_s0, %s2238_s24  ;;  %p2242_p11 = scmp.lt.u32.totalorder %s2238_s24, %s2597_s0 }
  0x3c   :  { %p2244_p12 = pnand %p2242_p11, %p2239_p10 }
  0x3e   :  { %2247 = shalt.err (!%p2244_p12)
}
  0x3f   :  { %s2248_s6 = scalar_lea.vmem %s32_s20, 512  ;;  %p2253_p0 = scmp.lt.s32.totalorder %s32_s20, %s32_s20 }
  0x40   :  { %p2249_p13 = scmp.ne.s32.totalorder %s32_s20, %s2248_s6  ;;  %p2254_p1 = scmp.lt.s32.totalorder %s2248_s6, %s2248_s6 }
  0x42   :  { %p2255_p2 = por %p2254_p1, %p2253_p0 }
  0x44   :  { %p2256_p3 = pnand %p2255_p2, %p2249_p13 }
  0x46   :  { %2259 = shalt.err (!%p2256_p3)
}
  0x47   :  { %34 = dma.hbm_to_vmem [thread:$0]  %s2597_s0, 512, %s32_s20, [#allocation4]  }
  0x48   :  { %s2260_s4 = scalar_lea.hbm %s2599_s2, 8192 }
  0x49   :  { %p2261_p4 = scmp.ne.s32.totalorder %s2599_s2, %s2260_s4  ;;  %p2264_p5 = scmp.lt.u32.totalorder %s2260_s4, %s2599_s2 }
  0x4b   :  { %p2266_p6 = pnand %p2264_p5, %p2261_p4 }
  0x4d   :  { %2269 = shalt.err (!%p2266_p6)
}
  0x4e   :  { %s2270_s13 = scalar_lea.vmem %s51_s1, 8192  ;;  %p2275_p8 = scmp.lt.s32.totalorder %s51_s1, %s51_s1 }
  0x4f   :  { %p2271_p7 = scmp.ne.s32.totalorder %s51_s1, %s2270_s13  ;;  %p2276_p9 = scmp.lt.s32.totalorder %s2270_s13, %s2270_s13 }
  0x51   :  { %p2277_p10 = por %p2276_p9, %p2275_p8 }
  0x53   :  { %p2278_p11 = pnand %p2277_p10, %p2271_p7 }
  0x55   :  { %2281 = shalt.err (!%p2278_p11)
}
  0x56   :  { %56 = dma.hbm_to_vmem [thread:$0]  %s2599_s2, 8192, %s51_s1, [#allocation6], %s2337_s16, %s2337_s16, %s2338_s22  }
  0x57   :  { %s2341_s24 = smov [#allocation10]   ;;  %s2342_s26 = smov [#allocation13]  }
  0x58   :  { %s76_s25 = sshll.u32 %s2341_s24, 4  ;;  %s106_s28 = sshll.u32 %s2342_s26, 4  ;;  %s77_s25 = int_to_ptr.vmem [resolvable:$true] %s76_s25  ;;  %s107_s28 = int_to_ptr.vmem [resolvable:$true] %s106_s28 }
  0x59   :  { %s2282_s29 = scalar_lea.hbm %s2602_s5, 1024 }
  0x5a   :  { %p2283_p12 = scmp.ne.s32.totalorder %s2602_s5, %s2282_s29  ;;  %p2286_p13 = scmp.lt.u32.totalorder %s2282_s29, %s2602_s5 }
  0x5c   :  { %p2288_p0 = pnand %p2286_p13, %p2283_p12 }
  0x5e   :  { %2291 = shalt.err (!%p2288_p0)
}
  0x5f   :  { %s2292_s2 = scalar_lea.vmem %s77_s25, 1024  ;;  %p2297_p2 = scmp.lt.s32.totalorder %s77_s25, %s77_s25 }
  0x60   :  { %p2293_p1 = scmp.ne.s32.totalorder %s77_s25, %s2292_s2  ;;  %p2298_p3 = scmp.lt.s32.totalorder %s2292_s2, %s2292_s2 }
  0x62   :  { %p2299_p4 = por %p2298_p3, %p2297_p2 }
  0x64   :  { %p2300_p5 = pnand %p2299_p4, %p2293_p1 }
  0x66   :  { %2303 = shalt.err (!%p2300_p5)
}
  0x67   :  { %82 = dma.hbm_to_vmem [thread:$0]  %s2602_s5, 1024, %s77_s25, [#allocation9], %s2337_s16, %s2337_s16, %s2338_s22  }
  0x68   :  { %s2304_s23 = scalar_lea.hbm %s2607_s10, 2048 }
  0x69   :  { %p2305_p6 = scmp.ne.s32.totalorder %s2607_s10, %s2304_s23  ;;  %p2308_p7 = scmp.lt.u32.totalorder %s2304_s23, %s2607_s10 }
  0x6b   :  { %p2310_p8 = pnand %p2308_p7, %p2305_p6 }
  0x6d   :  { %2313 = shalt.err (!%p2310_p8)
}
  0x6e   :  { %s2314_s26 = scalar_lea.vmem %s107_s28, 2048  ;;  %p2319_p10 = scmp.lt.s32.totalorder %s107_s28, %s107_s28 }
  0x6f   :  { %p2315_p9 = scmp.ne.s32.totalorder %s107_s28, %s2314_s26  ;;  %p2320_p11 = scmp.lt.s32.totalorder %s2314_s26, %s2314_s26 }
  0x71   :  { %p2321_p12 = por %p2320_p11, %p2319_p10 }
  0x73   :  { %p2322_p13 = pnand %p2321_p12, %p2315_p9 }
  0x75   :  { %2325 = shalt.err (!%p2322_p13)
}
  0x76   :  { %112 = dma.hbm_to_vmem [thread:$0]  %s2607_s10, 2048, %s107_s28, [#allocation12], %s2337_s16, %s2337_s16, %s2338_s22  }
  0x77   :  { %2326 = dma.done.wait [#allocation4], 512  }
  0x78   :  { %2327 = vsyncadd [#allocation4], 4294966784 }
  0x79   :  { %2328 = dma.done.wait [#allocation6], 8320  }
  0x7a   :  { %2329 = vsyncadd [#allocation6], 4294958976 }
  0x7b   :  { %2330 = dma.done.wait [#allocation9], 4096  }
  0x7c   :  { %2331 = vsyncadd [#allocation9], 4294963200 }
  0x7d   :  { %2332 = dma.done.wait [#allocation12], 3072  }
  0x7e   :  { %2333 = vsyncadd [#allocation12], 4294964224  ;;  %v2343_v1 = vmov 2   ;;  %v2344_v2 = vmov 3   ;;  %v2528_v3 = vld [vmem:[#allocation5] sm:$0xff]  ;;  %v2034_v4 = vld [vmem:[#allocation7 + $0x40] sm:$0xff]  }
  0x7f   :  { %2028 = vset.pattern.permute.xlu0 %v2343_v1  ;;  %2030 = vset.pattern.permute.xlu1 %v2344_v2  ;;  %v2035_v5 = vld [vmem:[#allocation7] sm:$0xff]   ;;  %v2345_v8 = vmov 1   ;;  %v2038_v9 = vld [vmem:[#allocation7 + $0x48] sm:$0xff]   ;;  %v2042_v13 = vld [vmem:[#allocation7 + $0x50] sm:$0xff]   ;;  %v1376_v54 = vcvt.s32.f32 %v2528_v3  ;;  %v2346_v56 = vmov 0   ;;  %v2347_v59 = vmov 4  }
  0x80   :  { %930 = vperm.xlu0 %2028, %v2528_v3   ;;  %1265 = vperm.xlu1 %2030, %v2528_v3   ;;  %v2036_v6 = vld [vmem:[#allocation7 + $0xc0] sm:$0xff]   ;;  %v2039_v10 = vld [vmem:[#allocation7 + $0x8] sm:$0xff]   ;;  %v2043_v14 = vld [vmem:[#allocation7 + $0x10] sm:$0xff]   ;;  %vm2349_vm0 = vmmov 0   ;;  %vm1631_vm11 = vcmask 7168  }
  0x81   :  { %1792 = vmatprep.subr.bf16.mxu0 %v2034_v4  ;;  %v2037_v7 = vld [vmem:[#allocation7 + $0x80] sm:$0xff]   ;;  %1814 = vmatprep.subr.bf16.mxu1 %v2036_v6  ;;  %v2040_v11 = vld [vmem:[#allocation7 + $0xc8] sm:$0xff]   ;;  %v2044_v15 = vld [vmem:[#allocation7 + $0xd0] sm:$0xff]  }
  0x82   :  { %1793 = vmatpush3.bf16.msra.mxu0 %v2035_v5  ;;  %1815 = vmatpush3.bf16.msra.mxu1 %v2037_v7  ;;  %v2041_v12 = vld [vmem:[#allocation7 + $0x88] sm:$0xff]   ;;  %v2045_v16 = vld [vmem:[#allocation7 + $0x90] sm:$0xff]   ;;  %v2046_v17 = vld [vmem:[#allocation7 + $0x58] sm:$0xff]  }
  0x83   :  { %1794 = vmatprep.subr.bf16.mxu0 %v2038_v9  ;;  %1816 = vmatprep.subr.bf16.mxu1 %v2040_v11  ;;  %v2047_v18 = vld [vmem:[#allocation7 + $0x18] sm:$0xff]   ;;  %v2050_v21 = vld [vmem:[#allocation7 + $0x60] sm:$0xff]   ;;  %v2054_v25 = vld [vmem:[#allocation7 + $0x68] sm:$0xff]  }
  0x84   :  { %2029 = vset.pattern.permute.xlu0 %v2345_v8  ;;  %v2048_v19 = vld [vmem:[#allocation7 + $0xd8] sm:$0xff]   ;;  %v2051_v22 = vld [vmem:[#allocation7 + $0x20] sm:$0xff]   ;;  %v2055_v26 = vld [vmem:[#allocation7 + $0x28] sm:$0xff]   ;;  %2031 = vset.pattern.permute.xlu1 %v2346_v56 }
  0x85   :  { %867 = vperm.xlu0 %2029, %v2528_v3   ;;  %v2049_v20 = vld [vmem:[#allocation7 + $0x98] sm:$0xff]   ;;  %v2052_v23 = vld [vmem:[#allocation7 + $0xe0] sm:$0xff]   ;;  %v2056_v27 = vld [vmem:[#allocation7 + $0xe8] sm:$0xff]   ;;  %1380 = vperm.xlu1 %2031, %v1376_v54  }
  0x86   :  { %1795 = vmatpush3.bf16.msra.mxu0 %v2039_v10  ;;  %1817 = vmatpush3.bf16.msra.mxu1 %v2041_v12  ;;  %v2053_v24 = vld [vmem:[#allocation7 + $0xa0] sm:$0xff]   ;;  %v2057_v28 = vld [vmem:[#allocation7 + $0xa8] sm:$0xff]   ;;  %v2058_v29 = vld [vmem:[#allocation7 + $0x70] sm:$0xff]  }
  0x87   :  { %1796 = vmatprep.subr.bf16.mxu0 %v2042_v13  ;;  %1818 = vmatprep.subr.bf16.mxu1 %v2044_v15  ;;  %v2059_v30 = vld [vmem:[#allocation7 + $0x30] sm:$0xff]   ;;  %v2062_v33 = vld [vmem:[#allocation7 + $0x78] sm:$0xff]   ;;  %v2068_v40 = vld [vmem:[#allocation7 + $0x140] sm:$0xff]  }
  0x88   :  { %v2060_v31 = vld [vmem:[#allocation7 + $0xf0] sm:$0xff]   ;;  %v2063_v34 = vld [vmem:[#allocation7 + $0x38] sm:$0xff]   ;;  %v2069_v41 = vld [vmem:[#allocation7 + $0x100] sm:$0xff]  }
  0x89   :  { %v2061_v32 = vld [vmem:[#allocation7 + $0xb0] sm:$0xff]   ;;  %v2064_v35 = vld [vmem:[#allocation7 + $0xf8] sm:$0xff]   ;;  %v142_v42 = vld [vmem:[#allocation3 + $0x8] sm:$0xff]  ;;  %2033 = vset.pattern.permute.xlu0 %v2347_v59  ;;  %2032 = vset.pattern.permute.xlu1 %v2347_v59 }
  0x8a   :  { %1797 = vmatpush3.bf16.msra.mxu0 %v2043_v14  ;;  %1819 = vmatpush3.bf16.msra.mxu1 %v2045_v16  ;;  %v2065_v36 = vld [vmem:[#allocation7 + $0xb8] sm:$0xff]   ;;  %v1644_v43 = vcombine.low %v142_v42, %v142_v42  ;;  %v1645_v44 = vcombine.high %v142_v42, %v142_v42  ;;  %v2072_v45 = vld [vmem:[#allocation7 + $0x1c0] sm:$0xff]   ;;  %v2074_v47 = vld [vmem:[#allocation7 + $0x148] sm:$0xff]  }
  0x8b   :  { %1798 = vmatprep.subr.bf16.mxu0 %v2046_v17  ;;  %1820 = vmatprep.subr.bf16.mxu1 %v2048_v19  ;;  %v141_v37 = vld [vmem:[#allocation3] sm:$0xff]  ;;  %v2073_v46 = vld [vmem:[#allocation7 + $0x180] sm:$0xff]   ;;  %v2075_v48 = vld [vmem:[#allocation7 + $0x108] sm:$0xff]  }
  0x8c   :  { %v1642_v38 = vcombine.low %v141_v37, %v141_v37  ;;  %v1643_v39 = vcombine.high %v141_v37, %v141_v37  ;;  %764 = vmatprep.mubr.bf16.mxu1 %v1645_v44  ;;  %v2076_v49 = vld [vmem:[#allocation7 + $0x1c8] sm:$0xff]   ;;  %v2078_v51 = vld [vmem:[#allocation7 + $0x150] sm:$0xff]   ;;  %v2082_v57 = vld [vmem:[#allocation7 + $0x158] sm:$0xff]   ;;  %1393 = vperm.xlu1 %2032, %v1376_v54  }
  0x8d   :  { %v2077_v50 = vld [vmem:[#allocation7 + $0x188] sm:$0xff]   ;;  %v2079_v52 = vld [vmem:[#allocation7 + $0x110] sm:$0xff]   ;;  %v2083_v58 = vld [vmem:[#allocation7 + $0x118] sm:$0xff]  }
  0x8e   :  { %1799 = vmatpush3.bf16.msra.mxu0 %v2047_v18  ;;  %1821 = vmatpush3.bf16.msra.mxu1 %v2049_v20  ;;  %v2080_v53 = vld [vmem:[#allocation7 + $0x1d0] sm:$0xff]   ;;  %v2084_v60 = vld [vmem:[#allocation7 + $0x1d8] sm:$0xff]   ;;  %v2086_v62 = vld [vmem:[#allocation7 + $0x160] sm:$0xff]   ;;  %v2348_v20 = vmov 0.0  }
  0x8f   :  { %1800 = vmatprep.subr.bf16.mxu0 %v2050_v21  ;;  %1822 = vmatprep.subr.bf16.mxu1 %v2052_v23  ;;  %v2081_v55 = vld [vmem:[#allocation7 + $0x190] sm:$0xff]   ;;  %v2085_v61 = vld [vmem:[#allocation7 + $0x198] sm:$0xff]   ;;  %v2087_v63 = vld [vmem:[#allocation7 + $0x120] sm:$0xff]  }
  0x90   :  { %724 = vmatprep.mubr.bf16.mxu0 %v1643_v39  ;;  %v2088_v0 = vld [vmem:[#allocation7 + $0x1e0] sm:$0xff]   ;;  %v2090_v2 = vld [vmem:[#allocation7 + $0x168] sm:$0xff]   ;;  %v2094_v6 = vld [vmem:[#allocation7 + $0x170] sm:$0xff]  }
  0x91   :  { %v2089_v1 = vld [vmem:[#allocation7 + $0x1a0] sm:$0xff]   ;;  %v2091_v3 = vld [vmem:[#allocation7 + $0x128] sm:$0xff]   ;;  %v2095_v7 = vld [vmem:[#allocation7 + $0x130] sm:$0xff]  }
  0x92   :  { %1801 = vmatpush3.bf16.msra.mxu0 %v2051_v22  ;;  %1823 = vmatpush3.bf16.msra.mxu1 %v2053_v24  ;;  %v2092_v4 = vld [vmem:[#allocation7 + $0x1e8] sm:$0xff]   ;;  %v2096_v8 = vld [vmem:[#allocation7 + $0x1f0] sm:$0xff]   ;;  %v2098_v10 = vld [vmem:[#allocation7 + $0x178] sm:$0xff]  }
  0x93   :  { %1802 = vmatprep.subr.bf16.mxu0 %v2054_v25  ;;  %1824 = vmatprep.subr.bf16.mxu1 %v2056_v27  ;;  %v2093_v5 = vld [vmem:[#allocation7 + $0x1a8] sm:$0xff]   ;;  %v2097_v9 = vld [vmem:[#allocation7 + $0x1b0] sm:$0xff]   ;;  %v2099_v11 = vld [vmem:[#allocation7 + $0x138] sm:$0xff]  }
  0x94   :  { %v2100_v12 = vld [vmem:[#allocation7 + $0x1f8] sm:$0xff]   ;;  %v143_v13 = vld [vmem:[#allocation3 + $0x10] sm:$0xff]  ;;  %v144_v17 = vld [vmem:[#allocation3 + $0x18] sm:$0xff] }
  0x95   :  { %v1646_v14 = vcombine.low %v143_v13, %v143_v13  ;;  %v1647_v15 = vcombine.high %v143_v13, %v143_v13  ;;  %v2103_v16 = vld [vmem:[#allocation7 + $0x1b8] sm:$0xff]   ;;  %v1648_v18 = vcombine.low %v144_v17, %v144_v17  ;;  %v1649_v19 = vcombine.high %v144_v17, %v144_v17  ;;  %v2106_v21 = vld [vmem:[#allocation10] sm:$0xff]   ;;  %v2107_v22 = vld [vmem:[#allocation10 + $0x8] sm:$0xff]  }
  0x96   :  { %1803 = vmatpush3.bf16.msra.mxu0 %v2055_v26  ;;  %1825 = vmatpush3.bf16.msra.mxu1 %v2057_v28  ;;  %v2108_v23 = vld [vmem:[#allocation8 + $0x40] sm:$0xff]   ;;  %v2111_v25 = vld [vmem:[#allocation8 + $0x48] sm:$0xff]   ;;  %v2110_v27 = vld [vmem:[#allocation10 + $0x10] sm:$0xff]  }
  0x97   :  { %1804 = vmatprep.subr.bf16.mxu0 %v2058_v29  ;;  %1826 = vmatprep.subr.bf16.mxu1 %v2060_v31  ;;  %v2109_v24 = vld [vmem:[#allocation8] sm:$0xff]   ;;  %v2112_v26 = vld [vmem:[#allocation8 + $0x8] sm:$0xff]   ;;  %v2114_v28 = vld [vmem:[#allocation8 + $0x50] sm:$0xff]  }
  0x98   :  { %v2113_v29 = vld [vmem:[#allocation10 + $0x18] sm:$0xff]   ;;  %v2123_v37 = vld [vmem:[#allocation8 + $0x68] sm:$0xff]   ;;  %v2127_v42 = vld [vmem:[#allocation8 + $0x30] sm:$0xff]  }
  0x99   :  { %v2117_v31 = vld [vmem:[#allocation8 + $0x58] sm:$0xff]   ;;  %v2124_v39 = vld [vmem:[#allocation8 + $0x28] sm:$0xff]   ;;  %v2133_v54 = vld [vmem:[#allocation8 + $0x90] sm:$0xff]  }
  0x9a   :  { %1805 = vmatpush3.bf16.msra.mxu0 %v2059_v30  ;;  %1827 = vmatpush3.bf16.msra.mxu1 %v2061_v32  ;;  %v2115_v30 = vld [vmem:[#allocation8 + $0x10] sm:$0xff]   ;;  %v2116_v32 = vld [vmem:[#allocation10 + $0x20] sm:$0xff]   ;;  %v2130_v44 = vld [vmem:[#allocation8 + $0x38] sm:$0xff]  }
  0x9b   :  { %1806 = vmatprep.subr.bf16.mxu0 %v2062_v33  ;;  %1828 = vmatprep.subr.bf16.mxu1 %v2064_v35  ;;  %v2118_v33 = vld [vmem:[#allocation8 + $0x18] sm:$0xff]   ;;  %v2119_v35 = vld [vmem:[#allocation10 + $0x28] sm:$0xff]  }
  0x9c   :  { %v2135_v56 = vld [vmem:[#allocation8 + $0x98] sm:$0xff]  }
  0x9d   :  { %v2138_v59 = vld [vmem:[#allocation11 + $0x18] sm:$0xff]  }
  0x9e   :  { %1807 = vmatpush3.bf16.msra.mxu0 %v2063_v34  ;;  %1829 = vmatpush3.bf16.msra.mxu1 %v2065_v36  ;;  %v2120_v34 = vld [vmem:[#allocation8 + $0x60] sm:$0xff]  }
  0x9f   :  { %1836 = vmatprep.subr.bf16.mxu0 %v2068_v40  ;;  %1858 = vmatprep.subr.bf16.mxu1 %v2072_v45  ;;  %v2121_v36 = vld [vmem:[#allocation8 + $0x20] sm:$0xff]   ;;  %v2126_v40 = vld [vmem:[#allocation8 + $0x70] sm:$0xff]   ;;  %v862_v45 = vlaneseq }
  0xa1   :  { %725 = vmatmul.mubr.bf16.vlgmr.msra.gmra.mrb[0].mxu0 %v1642_v38  ;;  %765 = vmatmul.mubr.bf16.vlgmr.msra.gmra.mrb[0].mxu1 %v1644_v43  ;;  %v2122_v38 = vld [vmem:[#allocation10 + $0x30] sm:$0xff]   ;;  %v2129_v43 = vld [vmem:[#allocation8 + $0x78] sm:$0xff]  }
  0xa2   :  { %1837 = vmatpush3.bf16.msra.mxu0 %v2069_v41  ;;  %1859 = vmatpush3.bf16.msra.mxu1 %v2073_v46  ;;  %v2125_v41 = vld [vmem:[#allocation10 + $0x38] sm:$0xff]   ;;  %v2546_v46 = vand.u32 127, %v862_v45 }
  0xa3   :  { %1838 = vmatprep.subr.bf16.mxu0 %v2074_v47  ;;  %1860 = vmatprep.subr.bf16.mxu1 %v2076_v49 }
  0xa4   :  { %804 = vmatprep.mubr.bf16.mxu0 %v1647_v15  ;;  %844 = vmatprep.mubr.bf16.mxu1 %v1649_v19  ;;  %v864_v49 = vadd.s32 128, %v2546_v46  ;;  %v2147_v19 = vld [vmem:[#allocation13] sm:$0xff]  }
  0xa6   :  { %1839 = vmatpush3.bf16.msra.mxu0 %v2075_v48  ;;  %1861 = vmatpush3.bf16.msra.mxu1 %v2077_v50  ;;  %v2128_v48 = vld [vmem:[#allocation8 + $0x80] sm:$0xff]   ;;  %v2350_v50 = vmov 1.0|1.0  }
  0xa7   :  { %1840 = vmatprep.subr.bf16.mxu0 %v2078_v51  ;;  %1862 = vmatprep.subr.bf16.mxu1 %v2080_v53  ;;  %v2131_v51 = vld [vmem:[#allocation8 + $0x88] sm:$0xff]   ;;  %v2132_v53 = vld [vmem:[#allocation11] sm:$0xff]  }
  0xaa   :  { %1841 = vmatpush3.bf16.msra.mxu0 %v2079_v52  ;;  %1863 = vmatpush3.bf16.msra.mxu1 %v2081_v55  ;;  %v2134_v55 = vld [vmem:[#allocation11 + $0x8] sm:$0xff]  }
  0xab   :  { %1842 = vmatprep.subr.bf16.mxu0 %v2082_v57  ;;  %1864 = vmatprep.subr.bf16.mxu1 %v2084_v60  ;;  %v2136_v57 = vld [vmem:[#allocation11 + $0x10] sm:$0xff]   ;;  %v2139_v60 = vld [vmem:[#allocation8 + $0xa8] sm:$0xff]  }
  0xae   :  { %1843 = vmatpush3.bf16.msra.mxu0 %v2083_v58  ;;  %1865 = vmatpush3.bf16.msra.mxu1 %v2085_v61  ;;  %v2137_v58 = vld [vmem:[#allocation8 + $0xa0] sm:$0xff]  }
  0xaf   :  { %1844 = vmatprep.subr.bf16.mxu0 %v2086_v62  ;;  %1866 = vmatprep.subr.bf16.mxu1 %v2088_v0  ;;  %v2140_v61 = vld [vmem:[#allocation11 + $0x20] sm:$0xff]   ;;  %v2141_v62 = vld [vmem:[#allocation8 + $0xb0] sm:$0xff]   ;;  %v2142_v0 = vld [vmem:[#allocation11 + $0x28] sm:$0xff]  }
  0xb2   :  { %1845 = vmatpush3.bf16.msra.mxu0 %v2087_v63  ;;  %1867 = vmatpush3.bf16.msra.mxu1 %v2089_v1  ;;  %v865_v63 = vadd.s32 256, %v2546_v46  ;;  %v2143_v1 = vld [vmem:[#allocation8 + $0xb8] sm:$0xff]  }
  0xb3   :  { %1846 = vmatprep.subr.bf16.mxu0 %v2090_v2  ;;  %1868 = vmatprep.subr.bf16.mxu1 %v2092_v4  ;;  %v2144_v2 = vld [vmem:[#allocation11 + $0x30] sm:$0xff]   ;;  %v2145_v4 = vld [vmem:[#allocation11 + $0x38] sm:$0xff]  }
  0xb6   :  { %1847 = vmatpush3.bf16.msra.mxu0 %v2091_v3  ;;  %1869 = vmatpush3.bf16.msra.mxu1 %v2093_v5 }
  0xb7   :  { %1848 = vmatprep.subr.bf16.mxu0 %v2094_v6  ;;  %1870 = vmatprep.subr.bf16.mxu1 %v2096_v8  ;;  %v1641_v6 = vld [vmem:[%s2600_s3] ss:$0 sm:$0xff] }
  0xba   :  { %1849 = vmatpush3.bf16.msra.mxu0 %v2095_v7  ;;  %1871 = vmatpush3.bf16.msra.mxu1 %v2097_v9 }
  0xbb   :  { %1850 = vmatprep.subr.bf16.mxu0 %v2098_v10  ;;  %1872 = vmatprep.subr.bf16.mxu1 %v2100_v12 }
  0xbe   :  { %1851 = vmatpush3.bf16.msra.mxu0 %v2099_v11  ;;  %1873 = vmatpush3.bf16.msra.mxu1 %v2103_v16 }
  0xbf   :  { %1951 = vmatprep.subr.bf16.mxu0 %v2348_v20  ;;  %1889 = vmatprep.subr.bf16.mxu1 %v2108_v23  ;;  %v2151_v23 = vld [vmem:[#allocation13 + $0x10] sm:$0xff]  }
  0xc1   :  { %805 = vmatmul.mubr.bf16.vlgmr.msra.gmra.mrb[4].mxu0 %v1646_v14  ;;  %845 = vmatmul.mubr.bf16.vlgmr.msra.gmra.mrb[4].mxu1 %v1648_v18  ;;  %v2146_v18 = vld [vmem:[#allocation13 + $0x40] sm:$0xff]  }
  0xc2   :  { %1952 = vmatpush3.bf16.msra.mxu0 %v2106_v21  ;;  %1967 = vmatprep.mubr.msk.bf16.mxu0 %vm2349_vm0, %v2348_v20  ;;  %v2149_v21 = vld [vmem:[#allocation13 + $0x8] sm:$0xff]  }
  0xc3   :  { %1953 = vmatprep.subr.bf16.mxu0 %v2348_v20  ;;  %1890 = vmatpush3.bf16.msra.mxu1 %v2109_v24  ;;  %v2152_v24 = vld [vmem:[#allocation13 + $0x58] sm:$0xff]  }
  0xc4   :  { %1891 = vmatprep.subr.bf16.mxu1 %v2111_v25  ;;  %v2153_v25 = vld [vmem:[#allocation13 + $0x18] sm:$0xff]  }
  0xc6   :  { %1954 = vmatpush3.bf16.msra.mxu0 %v2107_v22  ;;  %v2150_v22 = vld [vmem:[#allocation13 + $0x50] sm:$0xff]  }
  0xc7   :  { %1955 = vmatprep.subr.bf16.mxu0 %v2348_v20  ;;  %1892 = vmatpush3.bf16.msra.mxu1 %v2112_v26  ;;  %v2154_v26 = vld [vmem:[#allocation13 + $0x60] sm:$0xff]  }
  0xc8   :  { %1893 = vmatprep.subr.bf16.mxu1 %v2114_v28  ;;  %v2156_v28 = vld [vmem:[#allocation13 + $0x68] sm:$0xff]  }
  0xca   :  { %1956 = vmatpush3.bf16.msra.mxu0 %v2110_v27  ;;  %v2155_v27 = vld [vmem:[#allocation13 + $0x20] sm:$0xff]  }
  0xcb   :  { %1957 = vmatprep.subr.bf16.mxu0 %v2348_v20  ;;  %1894 = vmatpush3.bf16.msra.mxu1 %v2115_v30  ;;  %v2158_v30 = vld [vmem:[#allocation13 + $0x70] sm:$0xff]  }
  0xcc   :  { %1895 = vmatprep.subr.bf16.mxu1 %v2117_v31 }
  0xce   :  { %1958 = vmatpush3.bf16.msra.mxu0 %v2113_v29  ;;  %v2157_v29 = vld [vmem:[#allocation13 + $0x28] sm:$0xff]  }
  0xcf   :  { %1959 = vmatprep.subr.bf16.mxu0 %v2348_v20  ;;  %1896 = vmatpush3.bf16.msra.mxu1 %v2118_v33  ;;  %v2159_v33 = vld [vmem:[#allocation13 + $0x30] sm:$0xff]  }
  0xd0   :  { %1897 = vmatprep.subr.bf16.mxu1 %v2120_v34 }
  0xd2   :  { %1960 = vmatpush3.bf16.msra.mxu0 %v2116_v32 }
  0xd3   :  { %1961 = vmatprep.subr.bf16.mxu0 %v2348_v20  ;;  %1898 = vmatpush3.bf16.msra.mxu1 %v2121_v36 }
  0xd4   :  { %1899 = vmatprep.subr.bf16.mxu1 %v2123_v37  ;;  %v2160_v37 = vld [vmem:[#allocation13 + $0x78] sm:$0xff]  }
  0xd6   :  { %1962 = vmatpush3.bf16.msra.mxu0 %v2119_v35 }
  0xd7   :  { %1963 = vmatprep.subr.bf16.mxu0 %v2348_v20  ;;  %1900 = vmatpush3.bf16.msra.mxu1 %v2124_v39 }
  0xd8   :  { %1901 = vmatprep.subr.bf16.mxu1 %v2126_v40 }
  0xda   :  { %1964 = vmatpush3.bf16.msra.mxu0 %v2122_v38 }
  0xdb   :  { %1965 = vmatprep.subr.bf16.mxu0 %v2348_v20  ;;  %1902 = vmatpush3.bf16.msra.mxu1 %v2127_v42 }
  0xdc   :  { %1903 = vmatprep.subr.bf16.mxu1 %v2129_v43 }
  0xde   :  { %1966 = vmatpush3.bf16.msra.mxu0 %v2125_v41 }
  0xdf   :  { %1971 = vmatprep.subr.bf16.mxu0 %v2348_v20  ;;  %1904 = vmatpush3.bf16.msra.mxu1 %v2130_v44  ;;  %v2161_v44 = vld [vmem:[#allocation13 + $0x38] sm:$0xff]  }
  0xe0   :  { %1991 = vmatprep.subr.bf16.mxu1 %v2348_v20 }
  0xff   :  { %v931_v47 = vpop.permute.xlu0 %930  ;;  %v1266_v3 = vpop.permute.xlu1 %1265 }
 0x100   :  { %vm932_vm1 = vcmp.eq.s32.totalorder %v2546_v46, %v931_v47  ;;  %vm1267_vm9 = vcmp.eq.s32.totalorder %v2546_v46, %v1266_v3 }
 0x101   :  { %vm1726_vm2 = vmpackc.low %vm932_vm1, %vm932_vm1 }
 0x102   :  { %1968 = vmatmul.mubr.msk.bf16.vlgmr.msra.gmra.mrb[8].mxu0 %vm1726_vm2, %v2350_v50  ;;  %vm1767_vm10 = vmpackc.low %vm1267_vm9, %vm1267_vm9 }
 0x103   :  { %1972 = vmatpush3.bf16.msra.mxu0 %v2128_v48  ;;  %1987 = vmatprep.mubr.msk.bf16.mxu0 %vm2349_vm0, %v2348_v20 }
 0x104   :  { %v868_v52 = vpop.permute.xlu0 %867  ;;  %1973 = vmatprep.subr.bf16.mxu0 %v2348_v20 }
 0x105   :  { %vm869_vm3 = vcmp.eq.s32.totalorder %v2546_v46, %v868_v52  ;;  %vm870_vm4 = vcmp.eq.s32.totalorder %v864_v49, %v868_v52  ;;  %vm871_vm7 = vcmp.eq.s32.totalorder %v865_v63, %v868_v52 }
 0x106   :  { %vm1754_vm5 = vmpackc.low %vm869_vm3, %vm869_vm3 }
 0x107   :  { %1974 = vmatpush3.bf16.msra.mxu0 %v2131_v51  ;;  %vm1752_vm6 = vmpackc.low %vm870_vm4, %vm870_vm4 }
 0x108   :  { %1975 = vmatprep.subr.bf16.mxu0 %v2348_v20  ;;  %1753 = vmatprep.mubr.msk.bf16.mxu1 %vm1752_vm6, %v2350_v50  ;;  %vm1756_vm8 = vmpackc.low %vm871_vm7, %vm871_vm7 }
 0x109   :  { %1755 = vmatmul.mubr.msk.bf16.vlgmr.msra.gmra.mrb[8].mxu1 %vm1754_vm5, %v2350_v50 }
 0x10a   :  { %1992 = vmatpush3.bf16.msra.mxu1 %v2132_v53  ;;  %2007 = vmatprep.mubr.msk.bf16.mxu1 %vm2349_vm0, %v2348_v20 }
 0x10b   :  { %1976 = vmatpush3.bf16.msra.mxu0 %v2133_v54  ;;  %1993 = vmatprep.subr.bf16.mxu1 %v2348_v20 }
 0x10c   :  { %1977 = vmatprep.subr.bf16.mxu0 %v2348_v20 }
 0x10e   :  { %1994 = vmatpush3.bf16.msra.mxu1 %v2134_v55 }
 0x10f   :  { %1978 = vmatpush3.bf16.msra.mxu0 %v2135_v56  ;;  %1995 = vmatprep.subr.bf16.mxu1 %v2348_v20 }
 0x110   :  { %1979 = vmatprep.subr.bf16.mxu0 %v2348_v20 }
 0x112   :  { %1996 = vmatpush3.bf16.msra.mxu1 %v2136_v57  ;;  %v1381_v57 = vpop.permute.xlu1 %1380 }
 0x113   :  { %1980 = vmatpush3.bf16.msra.mxu0 %v2137_v58  ;;  %1997 = vmatprep.subr.bf16.mxu1 %v2348_v20 }
 0x114   :  { %1981 = vmatprep.subr.bf16.mxu0 %v2348_v20 }
 0x116   :  { %1998 = vmatpush3.bf16.msra.mxu1 %v2138_v59 }
 0x117   :  { %1982 = vmatpush3.bf16.msra.mxu0 %v2139_v60  ;;  %1999 = vmatprep.subr.bf16.mxu1 %v2348_v20 }
 0x118   :  { %1983 = vmatprep.subr.bf16.mxu0 %v2348_v20 }
 0x11a   :  { %2000 = vmatpush3.bf16.msra.mxu1 %v2140_v61 }
 0x11b   :  { %1984 = vmatpush3.bf16.msra.mxu0 %v2141_v62  ;;  %2001 = vmatprep.subr.bf16.mxu1 %v2348_v20 }
 0x11c   :  { %1985 = vmatprep.subr.bf16.mxu0 %v2348_v20 }
 0x11e   :  { %2002 = vmatpush3.bf16.msra.mxu1 %v2142_v0  ;;  %v1769_v0 = vld [vmem:[%s2604_s7] ss:$0 sm:$0xff] }
 0x11f   :  { %1986 = vmatpush3.bf16.msra.mxu0 %v2143_v1  ;;  %2003 = vmatprep.subr.bf16.mxu1 %v2348_v20  ;;  %v1770_v1 = vld [vmem:[%s2605_s8] ss:$0 sm:$0xff] }
 0x120   :  { %1929 = vmatprep.subr.bf16.mxu0 %v2146_v18 }
 0x122   :  { %1988 = vmatmul.mubr.msk.bf16.vlgmr.msra.gmra.mrb[12].mxu0 %vm1756_vm8, %v2350_v50  ;;  %2004 = vmatpush3.bf16.msra.mxu1 %v2144_v2  ;;  %v1394_v2 = vpop.permute.xlu1 %1393 }
 0x123   :  { %2005 = vmatprep.subr.bf16.mxu1 %v2348_v20  ;;  %1930 = vmatpush3.bf16.msra.mxu0 %v2147_v19  ;;  %v2148_v20 = vld [vmem:[#allocation13 + $0x48] sm:$0xff]  }
 0x124   :  { %1931 = vmatprep.subr.bf16.mxu0 %v2148_v20 }
 0x126   :  { %2006 = vmatpush3.bf16.msra.mxu1 %v2145_v4  ;;  %v1389_v4 = vmul.f32 %v1769_v0, %v1381_v57 }
 0x127   :  { %1932 = vmatpush3.bf16.msra.mxu0 %v2149_v21 }
 0x128   :  { %1933 = vmatprep.subr.bf16.mxu0 %v2150_v22 }
 0x129   :  { %2008 = vmatmul.mubr.msk.bf16.vlgmr.msra.gmra.mrb[12].mxu1 %vm1767_vm10, %v2350_v50 }
 0x12b   :  { %1934 = vmatpush3.bf16.msra.mxu0 %v2151_v23 }
 0x12c   :  { %1935 = vmatprep.subr.bf16.mxu0 %v2152_v24 }
 0x12f   :  { %1936 = vmatpush3.bf16.msra.mxu0 %v2153_v25 }
 0x130   :  { %1937 = vmatprep.subr.bf16.mxu0 %v2154_v26 }
 0x133   :  { %1938 = vmatpush3.bf16.msra.mxu0 %v2155_v27 }
 0x134   :  { %1939 = vmatprep.subr.bf16.mxu0 %v2156_v28 }
 0x137   :  { %1940 = vmatpush3.bf16.msra.mxu0 %v2157_v29 }
 0x138   :  { %1941 = vmatprep.subr.bf16.mxu0 %v2158_v30 }
 0x13b   :  { %1942 = vmatpush3.bf16.msra.mxu0 %v2159_v33  ;;  %v1772_v33 = vld [vmem:[%s2608_s11] ss:$0 sm:$0xff] }
 0x13c   :  { %1943 = vmatprep.subr.bf16.mxu0 %v2160_v37 }
 0x13f   :  { %1944 = vmatpush3.bf16.msra.mxu0 %v2161_v44 }
 0x174   :  { %v1808_v5 = vpop.f32.mrb[0].mxu0  ;;  %v1830_v10 = vpop.f32.mrb[0].mxu1 }
 0x175   :  { %v1809_v7 = vpop.f32.mrb[1].mxu0  ;;  %v1831_v12 = vpop.f32.mrb[1].mxu1 }
 0x176   :  { %v1810_v8 = vadd.f32 %v1809_v7, %v1808_v5  ;;  %v1811_v9 = vpop.f32.mrb[2].mxu0  ;;  %v1832_v14 = vadd.f32 %v1831_v12, %v1830_v10  ;;  %v1833_v15 = vpop.f32.mrb[2].mxu1  ;;  %v1402_v7 = vmul.f32 %v1770_v1, %v1394_v2  ;;  %v1771_v12 = vld [vmem:[%s2606_s9] ss:$0 sm:$0xff] }
 0x177   :  { %v1812_v11 = vpop.f32.mrb[3].mxu0  ;;  %v1834_v16 = vpop.f32.mrb[3].mxu1 }
 0x178   :  { %v727_v13 = vadd.f32 %v1810_v8, %v1641_v6 }
 0x17a   :  { %v767_v17 = vadd.f32 %v1832_v14, %v727_v13 }
 0x194   :  { %v1852_v31 = vpop.f32.mrb[4].mxu0  ;;  %v1874_v35 = vpop.f32.mrb[4].mxu1 }
 0x195   :  { %v1853_v32 = vpop.f32.mrb[5].mxu0  ;;  %v1875_v38 = vpop.f32.mrb[5].mxu1 }
 0x196   :  { %v1854_v34 = vadd.f32 %v1853_v32, %v1852_v31  ;;  %v1855_v36 = vpop.f32.mrb[6].mxu0  ;;  %v1876_v41 = vadd.f32 %v1875_v38, %v1874_v35  ;;  %v1877_v42 = vpop.f32.mrb[6].mxu1 }
 0x197   :  { %v1856_v39 = vpop.f32.mrb[7].mxu0  ;;  %v1878_v43 = vpop.f32.mrb[7].mxu1 }
 0x198   :  { %v807_v40 = vadd.f32 %v1854_v34, %v767_v17 }
 0x19a   :  { %v847_v45 = vadd.f32 %v1876_v41, %v807_v40 }
 0x19c   :  { %v853_v60 = vmul.f32 0.044715, %v847_v45  ;;  %v852_v25 = vmul.f32 0.5, %v847_v45 }
 0x19e   :  { %v854_v63 = vmul.f32 %v853_v60, %v847_v45 }
 0x1a0   :  { %v855_v8 = vmul.f32 %v854_v63, %v847_v45 }
 0x1a2   :  { %v856_v14 = vadd.f32 %v855_v8, %v847_v45 }
 0x1a4   :  { %v857_v17 = vmul.f32 0.7978846, %v856_v14 }
 0x1a6   :  { %2162 = vtanh.f32 %v857_v17 }
 0x1b0   :  { %v2163_v22 = vpop.eup %2162 }
 0x1b1   :  { %v859_v23 = vadd.f32 1.0, %v2163_v22 }
 0x1b3   :  { %v860_v28 = vmul.f32 %v859_v23, %v852_v25 }
 0x1b5   :  { %v1421_v31 = vpack.c.bf16 %v860_v28, %v860_v28 }
 0x1d5   :  { %v1034_v46 = vpop.f32.mrb[8].mxu0 }
 0x1d6   :  { %v1969_v47 = vpop.f32.mrb[9].mxu0 }
 0x1d7   :  { %v1037_v48 = vpop.f32.mrb[10].mxu0  ;;  %v1789_v47 = vld [vmem:[%s2609_s12] ss:$0 sm:$0xff] }
 0x1d8   :  { %v1970_v49 = vpop.f32.mrb[11].mxu0 }
 0x1dc   :  { %v1905_v50 = vpop.f32.mrb[8].mxu1 }
 0x1dd   :  { %v1906_v51 = vpop.f32.mrb[9].mxu1 }
 0x1de   :  { %v1907_v52 = vadd.f32 %v1906_v51, %v1905_v50  ;;  %v1908_v53 = vpop.f32.mrb[10].mxu1  ;;  %v1790_v50 = vld [vmem:[#allocation2] ss:$0 sm:$0xff] }
 0x1df   :  { %v1909_v54 = vpop.f32.mrb[11].mxu1 }
 0x1e0   :  { %v1219_v55 = vadd.f32 %v1907_v52, %v1034_v46 }
 0x1f5   :  { %v1258_v56 = vpop.f32.mrb[12].mxu0 }
 0x1f6   :  { %v1259_v58 = vadd.f32 %v1258_v56, %v1219_v55  ;;  %v1989_v59 = vpop.f32.mrb[13].mxu0 }
 0x1f7   :  { %v1261_v61 = vpop.f32.mrb[14].mxu0 }
 0x1f8   :  { %v1990_v62 = vpop.f32.mrb[15].mxu0 }
 0x1fc   :  { %v1369_v3 = vpop.f32.mrb[12].mxu1 }
 0x1fd   :  { %v1375_v5 = vadd.f32 %v1369_v3, %v1259_v58  ;;  %v2009_v6 = vpop.f32.mrb[13].mxu1 }
 0x1fe   :  { %v1372_v9 = vpop.f32.mrb[14].mxu1 }
 0x1ff   :  { %v1390_v10 = vadd.f32 %v1389_v4, %v1375_v5  ;;  %v2010_v11 = vpop.f32.mrb[15].mxu1 }
 0x201   :  { %v1403_v13 = vadd.f32 %v1402_v7, %v1390_v10 }
 0x203   :  { %v1411_v15 = vadd.f32 %v1771_v12, %v1403_v13 }
 0x205   :  { %v1413_v16 = vmul.f32 0.044715, %v1411_v15  ;;  %v1412_v26 = vmul.f32 0.5, %v1411_v15 }
 0x207   :  { %v1414_v18 = vmul.f32 %v1413_v16, %v1411_v15 }
 0x209   :  { %v1415_v19 = vmul.f32 %v1414_v18, %v1411_v15 }
 0x20b   :  { %v1416_v20 = vadd.f32 %v1415_v19, %v1411_v15 }
 0x20d   :  { %v1417_v21 = vmul.f32 0.7978846, %v1416_v20 }
 0x20f   :  { %2164 = vtanh.f32 %v1417_v21 }
 0x219   :  { %v2165_v24 = vpop.eup %2164 }
 0x21a   :  { %v1419_v27 = vadd.f32 1.0, %v2165_v24 }
 0x21c   :  { %v1420_v29 = vmul.f32 %v1419_v27, %v1412_v26 }
 0x21e   :  { %v1422_v30 = vpack.c.bf16 %v1420_v29, %v1420_v29 }
 0x220   :  { %1590 = vmatprep.mubr.bf16.mxu0 %v1422_v30 }
 0x221   :  { %1591 = vmatmul.mubr.bf16.vlgmr.msra.gmra.mrb[16].mxu0 %v1421_v31 }
 0x2f4   :  { %v1945_v32 = vpop.f32.mrb[16].mxu0 }
 0x2f5   :  { %v1946_v34 = vpop.f32.mrb[17].mxu0 }
 0x2f6   :  { %v1947_v35 = vadd.f32 %v1946_v34, %v1945_v32  ;;  %v1948_v36 = vpop.f32.mrb[18].mxu0 }
 0x2f7   :  { %v1949_v37 = vpop.f32.mrb[19].mxu0 }
 0x2f8   :  { %v1593_v38 = vadd.f32 %v1947_v35, %v1772_v33 }
 0x2fa   :  { %v1599_v39 = vmul.f32 0.044715, %v1593_v38  ;;  %v1598_v45 = vmul.f32 0.5, %v1593_v38 }
 0x2fc   :  { %v1600_v40 = vmul.f32 %v1599_v39, %v1593_v38 }
 0x2fe   :  { %v1601_v41 = vmul.f32 %v1600_v40, %v1593_v38 }
 0x300   :  { %v1602_v42 = vadd.f32 %v1601_v41, %v1593_v38 }
 0x302   :  { %v1603_v43 = vmul.f32 0.7978846, %v1602_v42 }
 0x304   :  { %2166 = vtanh.f32 %v1603_v43 }
 0x30e   :  { %v2167_v44 = vpop.eup %2166 }
 0x30f   :  { %v1605_v46 = vadd.f32 1.0, %v2167_v44 }
 0x311   :  { %v1606_v48 = vmul.f32 %v1605_v46, %v1598_v45 }
 0x313   :  { %v1614_v49 = vmul.f32 %v1789_v47, %v1606_v48 }
 0x315   :  { %1615 = vadd.xlane.f32.xlu0 %v1614_v49 }
 0x3a2   :  { %v1616_v51 = vpop.xlane.xlu0 %1615 }
 0x3a3   :  { %v1624_v52 = vadd.f32 %v1790_v50, %v1616_v51 }
 0x3a5   :  { %v1791_v53 = vmul.f32 -1.442695, %v1624_v52 }
 0x3a7   :  { %2168 = vpow2.f32 %v1791_v53 }
 0x3b1   :  { %v2169_v54 = vpop.eup %2168 }
 0x3b2   :  { %v1628_v55 = vadd.f32 1.0, %v2169_v54 }
 0x3b4   :  { %2170 = vrcp.f32 %v1628_v55 }
 0x3be   :  { %v2171_v56 = vpop.eup %2170 }
 0x3bf   :  { %1632 = vst.msk [vmem:[%s2611_s14] sm:$0xff] %vm1631_vm11, %v2171_v56 }
 0x3c0   :  { %1637 = vsyncpa [#allocation4], 1 }
 0x3c1   :  { %1638 = vsyncpa [#allocation6], 1 }
 0x3c2   :  { %1639 = vsyncpa [#allocation9], 1 }
 0x3c3   :  { %1640 = vsyncpa [#allocation12], 1 }

</bundles_post_ra>
